<compile_context>
chip_gen: v6e
topology: v6e:2x2x1
jax: 0.10.0
libtpu: 0.0.40
codegen_flags: <defaults>
</compile_context>

<pallas_src>
import functools

import jax
import jax.numpy as jnp
from jax import lax
from jax.experimental import pallas as pl
from jax.experimental.pallas import tpu as pltpu


def _dice_partial_kernel(pred_ref, tgt_ref, out_ref, *, total_p, grid_p, half,
                         needs_mask, dup_possible):
    """Accumulates per-class [intersection, pred_sum, target_sum] partials."""
    h = pl.program_id(0)          # spatial-split index (feeds v7x's 2nd core)
    j = pl.program_id(2)          # block index within this split's range
    step = h * half + j           # global spatial block index

    @pl.when(j == 0)
    def _():
        out_ref[...] = jnp.zeros_like(out_ref)

    def compute():
        x = pred_ref[0].astype(jnp.float32)       # (C, T) logits (cast in-kernel)
        t = tgt_ref[0].astype(jnp.int32)          # (1, T) labels (int8 -> int32)
        n_cls, blk = x.shape

        # Numerically stable softmax over the class (sublane) axis.
        m = jnp.max(x, axis=0, keepdims=True)     # (1, T)
        e = jnp.exp(x - m)                        # (C, T)
        s = jnp.sum(e, axis=0, keepdims=True)     # (1, T)
        # approx=True + Newton step was reviewed as a 1e-5-tolerance risk;
        # the exact reciprocal is kept (it is a (1, T)-row cost only).
        p = e * pl.reciprocal(s, approx=False)    # (C, T) probabilities

        cls = lax.broadcasted_iota(jnp.int32, (n_cls, blk), 0)

        def accumulate(p_v, t_v):
            onehot = (t_v == cls).astype(jnp.float32)                  # (C, T)
            inter = jnp.sum(p_v * onehot, axis=1, keepdims=True)       # (C, 1)
            psum = jnp.sum(p_v, axis=1, keepdims=True)                 # (C, 1)
            tsum = jnp.sum(onehot, axis=1, keepdims=True)              # (C, 1)
            # Three single-vreg RMW updates; noise next to the block compute.
            out_ref[0, :, 0:1] += inter
            out_ref[0, :, 1:2] += psum
            out_ref[0, :, 2:3] += tsum

        if needs_mask:
            is_full = (step + 1) * blk <= total_p

            @pl.when(is_full)
            def _():
                accumulate(p, t)                  # fast path: no mask work

            @pl.when(jnp.logical_not(is_full))
            def _():
                # Only the single partial block pays for the column mask.
                col = lax.broadcasted_iota(jnp.int32, (1, blk), 1)
                valid = (step * blk + col) < total_p
                # p-side mask keeps NaNs from uninitialised tail VMEM out of
                # psum; the -1 clamp on labels keeps them out of inter/tsum.
                accumulate(jnp.where(valid, p, 0.0), jnp.where(valid, t, -1))
        else:
            accumulate(p, t)

    if dup_possible:
        # Duplicate steps (2-way split of an odd block count): skip compute.
        @pl.when(step < grid_p)
        def _():
            compute()
    else:
        compute()


def dice_loss_pallas(pred, target, num_classes, *,
                     target_block_bytes=4 << 20,
                     vmem_limit_bytes=48 * 1024 * 1024):
    """pred: (N, C, *spatial) logits (any float dtype); target: (N, *spatial) ints.
    Returns the scalar soft-Dice loss (float32), matching DiceLoss.forward."""
    N, C = pred.shape[0], pred.shape[1]
    assert C == num_classes
    spatial = pred.shape[2:]
    P = 1
    for d in spatial:
        P *= d
    assert target.shape == (N,) + spatial

    pred3 = pred.reshape(N, C, P)                  # free reshape, native dtype
    label_dtype = jnp.int8 if num_classes <= 127 else jnp.int32
    tgt3 = target.reshape(N, 1, P)
    if tgt3.dtype != jnp.dtype(label_dtype):
        tgt3 = tgt3.astype(label_dtype)            # tiny pass; 4x less kernel HBM

    # Block width: ~target_block_bytes of *f32 intermediates* per step (the
    # in-kernel temporaries are f32 regardless of input dtype), lane-aligned.
    lanes = (target_block_bytes // (C * 4)) // 128 * 128
    lanes = max(128, lanes)
    if P <= lanes:
        tile = P                                   # single full-extent block
    else:
        tile = lanes                               # multiple of 128
    grid_p = pl.cdiv(P, tile)
    needs_mask = (grid_p * tile != P)              # only the last block is partial

    # Split the spatial block range across a leading parallel axis so both
    # v7x TensorCores have work even for N == 1 / odd N.
    n_split = 2 if grid_p >= 2 else 1
    half = pl.cdiv(grid_p, n_split)
    dup_possible = (n_split * half != grid_p)

    def _step(h, j):
        step = h * half + j
        if dup_possible:
            step = jnp.minimum(step, grid_p - 1)   # keep the duplicate DMA in bounds
        return step

    kernel = functools.partial(
        _dice_partial_kernel, total_p=P, grid_p=grid_p, half=half,
        needs_mask=needs_mask, dup_possible=dup_possible)

    partials = pl.pallas_call(
        kernel,
        out_shape=jax.ShapeDtypeStruct((n_split * N, C, 3), jnp.float32),
        grid_spec=pltpu.PrefetchScalarGridSpec(
            num_scalar_prefetch=0,
            grid=(n_split, N, half),
            in_specs=[
                pl.BlockSpec((1, C, tile), lambda h, n, j: (n, 0, _step(h, j))),
                pl.BlockSpec((1, 1, tile), lambda h, n, j: (n, 0, _step(h, j))),
            ],
            out_specs=pl.BlockSpec((1, C, 3), lambda h, n, j: (h * N + n, 0, 0)),
        ),
        compiler_params=pltpu.CompilerParams(
            dimension_semantics=("parallel", "parallel", "arbitrary"),
            vmem_limit_bytes=vmem_limit_bytes,
        ),
    )(pred3, tgt3)

    # Tiny epilogue in plain JAX: combine partials, apply the dice formula.
    totals = jnp.sum(partials, axis=0)             # (C, 3)
    eps = 1e-06
    inter = totals[:, 0]
    union = totals[:, 1] + totals[:, 2]
    dice = (2.0 * inter + eps) / (union + eps)
    return jnp.sum(1.0 - dice) / num_classes


def _dice_loss_ref(pred, target, num_classes):
    """Pure-JAX reference mirroring the PyTorch module."""
    eps = 1e-06
    p = jax.nn.softmax(pred.astype(jnp.float32), axis=1)          # (N, C, ...)
    onehot = jax.nn.one_hot(target, num_classes, dtype=jnp.float32)
    onehot = jnp.moveaxis(onehot, -1, 1)                           # -> (N, C, ...)
    loss = 0.0
    for i in range(num_classes):
        pi = p[:, i]
        ti = onehot[:, i]
        inter = jnp.sum(pi * ti)
        union = jnp.sum(pi) + jnp.sum(ti)
        loss = loss + 1.0 - (2.0 * inter + eps) / (union + eps)
    return loss / num_classes


if __name__ == "__main__":
    num_classes = 4
    key = jax.random.PRNGKey(0)
    k1, k2, k3, k4 = jax.random.split(key, 4)

    # Case 1: DiceLoss(num_classes=4, dims=2) at the spec's small 2-D shape.
    N, H, W = 2, 16, 16
    pred2d = jax.random.normal(k1, (N, num_classes, H, W), dtype=jnp.float32)
    tgt2d = jax.random.randint(k2, (N, H, W), 0, num_classes, dtype=jnp.int32)
    loss2d = jax.block_until_ready(dice_loss_pallas(pred2d, tgt2d, num_classes))
    ref2d = _dice_loss_ref(pred2d, tgt2d, num_classes)
    assert jnp.allclose(loss2d, ref2d, atol=1e-5, rtol=1e-5), (loss2d, ref2d)

    # Case 2: dims=3 shape with a deliberately tiny block budget so the
    # multi-block path (tail mask, 2-way spatial split, duplicate-step skip)
    # is exercised at small sizes.
    N, D, H, W = 2, 5, 6, 10
    pred3d = jax.random.normal(k3, (N, num_classes, D, H, W), dtype=jnp.float32)
    tgt3d = jax.random.randint(k4, (N, D, H, W), 0, num_classes, dtype=jnp.int32)
    loss3d = jax.block_until_ready(
        dice_loss_pallas(pred3d, tgt3d, num_classes, target_block_bytes=2048))
    ref3d = _dice_loss_ref(pred3d, tgt3d, num_classes)
    assert jnp.allclose(loss3d, ref3d, atol=1e-5, rtol=1e-5), (loss3d, ref3d)

    print("KERNEL_OK")
</pallas_src>

<mosaic_0001>
module attributes {stable_mosaic.version = 11 : i64} {
  func.func @_dice_partial_kernel(%arg0: i32, %arg1: i32, %arg2: i32, %arg3: memref<1x4x256xf32, #tpu.memory_space<vmem>>, %arg4: memref<1x1x256xi8, #tpu.memory_space<vmem>>, %arg5: memref<1x4x3xf32, #tpu.memory_space<vmem>>) attributes {dimension_semantics = [#tpu.dimension_semantics<parallel>, #tpu.dimension_semantics<parallel>, #tpu.dimension_semantics<arbitrary>], iteration_bounds = array<i64: 1, 2, 1>, scalar_prefetch = 0 : i64, scratch_operands = 0 : i64, tpu.core_type = #tpu.core_type<tc>, window_params = [{transform_indices = @transform_0, window_bounds = array<i64: 1, 4, 256>}, {transform_indices = @transform_1, window_bounds = array<i64: 1, 1, 256>}, {transform_indices = @transform_2, window_bounds = array<i64: 1, 4, 3>}]} {
    %c0_i32 = arith.constant 0 : i32
    %0 = arith.cmpi eq, %arg2, %c0_i32 : i32
    %1 = arith.extui %0 : i1 to i32
    %c0_i32_0 = arith.constant 0 : i32
    %2 = arith.cmpi ne, %1, %c0_i32_0 : i32
    scf.if %2 {
      %cst_26 = arith.constant 0.000000e+00 : f32
      %48 = vector.broadcast %cst_26 : f32 to vector<1x4x3xf32>
      %c0_27 = arith.constant 0 : index
      %c0_28 = arith.constant 0 : index
      %c0_29 = arith.constant 0 : index
      %49 = vector.load %arg5[%c0_27, %c0_28, %c0_29] : memref<1x4x3xf32, #tpu.memory_space<vmem>>, vector<1x4x3xf32>
      tpu.vector_store %arg5[%c0_27, %c0_28, %c0_29], %48 {strides = array<i32>} : memref<1x4x3xf32, #tpu.memory_space<vmem>>, vector<1x4x3xf32>,
    } else {
    }
    %c0 = arith.constant 0 : index
    %c0_1 = arith.constant 0 : index
    %c0_2 = arith.constant 0 : index
    %3 = vector.load %arg3[%c0, %c0_1, %c0_2] : memref<1x4x256xf32, #tpu.memory_space<vmem>>, vector<1x4x256xf32>
    %4 = vector.shape_cast %3 : vector<1x4x256xf32> to vector<4x256xf32>
    %c0_3 = arith.constant 0 : index
    %c0_4 = arith.constant 0 : index
    %c0_5 = arith.constant 0 : index
    %5 = vector.load %arg4[%c0_3, %c0_4, %c0_5] : memref<1x1x256xi8, #tpu.memory_space<vmem>>, vector<1x1x256xi8>
    %6 = vector.shape_cast %5 : vector<1x1x256xi8> to vector<1x256xi8>
    %7 = arith.extsi %6 : vector<1x256xi8> to vector<1x256xi32>
    %cst = arith.constant dense<0xFF800000> : vector<256xf32>
    %8 = vector.multi_reduction <maximumf>, %4, %cst [0] : vector<4x256xf32> to vector<256xf32>
    %9 = vector.shape_cast %8 : vector<256xf32> to vector<1x256xf32>
    %10 = vector.broadcast %9 : vector<1x256xf32> to vector<4x256xf32>
    %11 = arith.subf %4, %10 : vector<4x256xf32>
    %12 = math.exp %11 : vector<4x256xf32>
    %cst_6 = arith.constant dense<0.000000e+00> : vector<256xf32>
    %13 = vector.multi_reduction <add>, %12, %cst_6 [0] : vector<4x256xf32> to vector<256xf32>
    %14 = vector.shape_cast %13 : vector<256xf32> to vector<1x256xf32>
    %15 = tpu.reciprocal %14 : vector<1x256xf32> -> vector<1x256xf32>
    %16 = vector.broadcast %15 : vector<1x256xf32> to vector<4x256xf32>
    %17 = arith.mulf %12, %16 : vector<4x256xf32>
    %18 = tpu.iota {dimensions = array<i32: 0>} : vector<4x256xi32>
    %19 = vector.broadcast %7 : vector<1x256xi32> to vector<4x256xi32>
    %20 = arith.cmpi eq, %19, %18 : vector<4x256xi32>
    %21 = arith.extui %20 : vector<4x256xi1> to vector<4x256xi32>
    %22 = arith.sitofp %21 : vector<4x256xi32> to vector<4x256xf32>
    %23 = arith.mulf %17, %22 : vector<4x256xf32>
    %cst_7 = arith.constant dense<0.000000e+00> : vector<4xf32>
    %24 = vector.multi_reduction <add>, %23, %cst_7 [1] : vector<4x256xf32> to vector<4xf32>
    %25 = vector.shape_cast %24 : vector<4xf32> to vector<4x1xf32>
    %cst_8 = arith.constant dense<0.000000e+00> : vector<4xf32>
    %26 = vector.multi_reduction <add>, %17, %cst_8 [1] : vector<4x256xf32> to vector<4xf32>
    %27 = vector.shape_cast %26 : vector<4xf32> to vector<4x1xf32>
    %cst_9 = arith.constant dense<0.000000e+00> : vector<4xf32>
    %28 = vector.multi_reduction <add>, %22, %cst_9 [1] : vector<4x256xf32> to vector<4xf32>
    %29 = vector.shape_cast %28 : vector<4xf32> to vector<4x1xf32>
    %c0_10 = arith.constant 0 : index
    %c0_11 = arith.constant 0 : index
    %c0_12 = arith.constant 0 : index
    %30 = vector.load %arg5[%c0_10, %c0_11, %c0_12] : memref<1x4x3xf32, #tpu.memory_space<vmem>>, vector<1x4x1xf32>
    %31 = vector.shape_cast %30 : vector<1x4x1xf32> to vector<4x1xf32>
    %32 = arith.addf %31, %25 : vector<4x1xf32>
    %c0_13 = arith.constant 0 : index
    %c0_14 = arith.constant 0 : index
    %c0_15 = arith.constant 0 : index
    %33 = vector.load %arg5[%c0_13, %c0_14, %c0_15] : memref<1x4x3xf32, #tpu.memory_space<vmem>>, vector<1x4x1xf32>
    %34 = vector.shape_cast %33 : vector<1x4x1xf32> to vector<4x1xf32>
    %35 = vector.shape_cast %32 : vector<4x1xf32> to vector<1x4x1xf32>
    tpu.vector_store %arg5[%c0_13, %c0_14, %c0_15], %35 {strides = array<i32>} : memref<1x4x3xf32, #tpu.memory_space<vmem>>, vector<1x4x1xf32>,
    %c0_16 = arith.constant 0 : index
    %c0_17 = arith.constant 0 : index
    %c1 = arith.constant 1 : index
    %36 = vector.load %arg5[%c0_16, %c0_17, %c1] : memref<1x4x3xf32, #tpu.memory_space<vmem>>, vector<1x4x1xf32>
    %37 = vector.shape_cast %36 : vector<1x4x1xf32> to vector<4x1xf32>
    %38 = arith.addf %37, %27 : vector<4x1xf32>
    %c0_18 = arith.constant 0 : index
    %c0_19 = arith.constant 0 : index
    %c1_20 = arith.constant 1 : index
    %39 = vector.load %arg5[%c0_18, %c0_19, %c1_20] : memref<1x4x3xf32, #tpu.memory_space<vmem>>, vector<1x4x1xf32>
    %40 = vector.shape_cast %39 : vector<1x4x1xf32> to vector<4x1xf32>
    %41 = vector.shape_cast %38 : vector<4x1xf32> to vector<1x4x1xf32>
    tpu.vector_store %arg5[%c0_18, %c0_19, %c1_20], %41 {strides = array<i32>} : memref<1x4x3xf32, #tpu.memory_space<vmem>>, vector<1x4x1xf32>,
    %c0_21 = arith.constant 0 : index
    %c0_22 = arith.constant 0 : index
    %c2 = arith.constant 2 : index
    %42 = vector.load %arg5[%c0_21, %c0_22, %c2] : memref<1x4x3xf32, #tpu.memory_space<vmem>>, vector<1x4x1xf32>
    %43 = vector.shape_cast %42 : vector<1x4x1xf32> to vector<4x1xf32>
    %44 = arith.addf %43, %29 : vector<4x1xf32>
    %c0_23 = arith.constant 0 : index
    %c0_24 = arith.constant 0 : index
    %c2_25 = arith.constant 2 : index
    %45 = vector.load %arg5[%c0_23, %c0_24, %c2_25] : memref<1x4x3xf32, #tpu.memory_space<vmem>>, vector<1x4x1xf32>
    %46 = vector.shape_cast %45 : vector<1x4x1xf32> to vector<4x1xf32>
    %47 = vector.shape_cast %44 : vector<4x1xf32> to vector<1x4x1xf32>
    tpu.vector_store %arg5[%c0_23, %c0_24, %c2_25], %47 {strides = array<i32>} : memref<1x4x3xf32, #tpu.memory_space<vmem>>, vector<1x4x1xf32>,
    return
  }
  func.func @transform_0(%arg0: i32, %arg1: i32, %arg2: i32) -> (i32, i32, i32) {
    %c1_i32 = arith.constant 1 : i32
    %0 = arith.muli %arg0, %c1_i32 : i32
    %1 = arith.addi %0, %arg2 : i32
    %c0_i32 = arith.constant 0 : i32
    %c0_i32_0 = arith.constant 0 : i32
    return %arg1, %c0_i32, %1 : i32, i32, i32
  }
  func.func @transform_1(%arg0: i32, %arg1: i32, %arg2: i32) -> (i32, i32, i32) {
    %c1_i32 = arith.constant 1 : i32
    %0 = arith.muli %arg0, %c1_i32 : i32
    %1 = arith.addi %0, %arg2 : i32
    %c0_i32 = arith.constant 0 : i32
    %c0_i32_0 = arith.constant 0 : i32
    return %arg1, %c0_i32, %1 : i32, i32, i32
  }
  func.func @transform_2(%arg0: i32, %arg1: i32, %arg2: i32) -> (i32, i32, i32) {
    %c2_i32 = arith.constant 2 : i32
    %0 = arith.muli %arg0, %c2_i32 : i32
    %1 = arith.addi %0, %arg1 : i32
    %c0_i32 = arith.constant 0 : i32
    %c0_i32_0 = arith.constant 0 : i32
    %c0_i32_1 = arith.constant 0 : i32
    return %1, %c0_i32, %c0_i32_0 : i32, i32, i32
  }
}

</mosaic_0001>

<bundles_post_ra>
// kernel: tpu_custom_call.1
= control target key start
LH: loop header
LB: loop body
LE: loop exit
PB: predicated region body
PF: predicated region fallthrough
CT: control target
= control target key end

     0   :  { %7 = vsyncpa [#allocation3], 0  ;;  %s757_s0 = inlined_call_operand.hbm [shape: f32[2,4,256], index: 0, kind: input, shape index: {}]   ;;  %s758_s1 = inlined_call_operand.vmem [shape: s8[2,1,256], index: 1, kind: input, shape index: {}]   ;;  %s759_s2 = inlined_call_operand.vmem [shape: f32[2,4,3], index: 2, kind: output, shape index: {}]  }
   0x1   :  { %9 = vsyncpa [#allocation3 + $0x1], 0  ;;  %s635_s9 = smov 0   ;;  %s637_s10 = smov 0  }
   0x2   :  { %s639_s11 = smov 0   ;;  %s641_s12 = smov 0  }
   0x3   :  { %s643_s13 = smov 0   ;;  %s645_s14 = smov 0  }
   0x4 LB: > { %s459_s15 = sadd.s32 4294967295, %s616_s14   ;;  %s30_s16 = sadd.s32 1, %s612_s13  ;;  %s616_s14 = sphi %s645_s14, %s15_s14   ;;  %s612_s13 = sphi %s643_s13, %s767_s13   ;;  %s608_s12 = sphi %s641_s12, %s766_s12   ;;  %s604_s11 = sphi %s639_s11, %s765_s11   ;;  %s600_s10 = sphi %s637_s10, %s764_s10   ;;  %s596_s9 = sphi %s635_s9, %s763_s9  }
   0x5   : > { %p32_p0 = scmp.ge.s32.totalorder %s30_s16, 2  ;;  %s45_s17 = sadd.s32 1, %s604_s11 }
   0x6   : > { %p52_p1 = scmp.ne.s32.totalorder %s604_s11, %s600_s10  ;;  %p53_p2 = scmp.eq.s32.totalorder %s616_s14, 0 }
   0x7   : > { %s769_s16 = smov (%p32_p0, %s30_s16), 0  ;;  %p58_p4 = scmp.ne.s32.totalorder %s600_s10, %s596_s9 }
   0x8   : > { %p671_p3 = por %p53_p2, %p52_p1  ;;  %s40_s19 = ssub.s32 %s612_s13, %s769_s16 }
   0x9   : > { %p59_p5 = scmp.eq.s32.totalorder %s459_s15, 0  ;;  %p43_p6 = scmp.eq.s32.totalorder %s40_s19, 0 }
   0xa   : > { %p481_p8 = scmp.lt.s32.totalorder %s616_s14, 2  ;;  %s142_s22 = sand.u32 1, %s604_s11  }
   0xb   : > { %p678_p7 = por %p59_p5, %p58_p4  ;;  %s474_s23 = sshll.u32 %s612_s13, 7 }
   0xc   : > { %s684_s21 = scalar_select %p43_p6, %s604_s11, %s45_s17  }
   0xd   : > { %s463_s24 = sshll.u32 %s142_s22, 3  ;;  %s155_s27 = scalar_lea.hbm %s757_s0, %s474_s23 }
   0xe   : > { %s146_s28 = scalar_lea.vmem [#allocation2], %s463_s24  ;;  %p693_p9 = pnand %p481_p8, %p671_p3 }
   0xf   : > { %s157_s29 = sshll.u32 %s146_s28, 4  ;;  %p466_p10 = scmp.ge.s32.totalorder %s616_s14, 1  ;;  %s158_s29 = int_to_ptr.vmem [resolvable:$true] %s157_s29 }
  0x10   : > { %p176_p11 = scmp.lt.s32.totalorder %s616_s14, 3  ;;  %s143_s3 = scalar_lea.sflag [#allocation3], %s142_s22 }
  0x11   : > { %p540_p12 = pneg %p693_p9  ;;  %s551_s4 = scalar_lea.vmem %s158_s29, 128 }
  0x12   : > { %p552_p13 = scmp.ne.s32.totalorder %s158_s29, %s551_s4  ;;  %s618_s5 = smov [#allocation2]  }
  0x13   : > { %s556_s6 = sshll.u32 %s618_s5, 4  ;;  %s557_s6 = int_to_ptr.vmem [resolvable:$false] %s556_s6 }
  0x14   : > { %p554_p0 = pnand %p552_p13, %p540_p12  ;;  %s558_s7 = scalar_lea.vmem %s557_s6, 256 }
  0x15   : > { %p559_p2 = scmp.lt.s32.totalorder %s158_s29, %s557_s6  ;;  %p560_p3 = scmp.lt.s32.totalorder %s558_s7, %s551_s4 }
  0x16   : > { %p555_p1 = pneg %p554_p0 }
  0x17   : > { %p561_p4 = por %p560_p3, %p559_p2 }
  0x19   : > { %p562_p5 = pnand %p561_p4, %p555_p1 }
  0x1b   : > { %565 = shalt.err (!%p562_p5)
}
  0x1c   : > { %480 = dma.hbm_to_vmem [thread:$0]  (!%p693_p9), %s155_s27, 128, %s158_s29, %s143_s3  }
  0x1d   : > { %p177_p6 = pnand %p466_p10, %p176_p11 }
  0x1e   : > { %s182_s8 = sand.u32 (!%p177_p6), 1, %s600_s10  }
  0x1f   : > { %180 = sbr.rel (%p177_p6) target bundleno = 274 (0x112), region = 28  ;;  %s467_s9 = sshll.u32 (!%p177_p6), %s182_s8, 3 }
  0x20   : > { %s183_s15 = scalar_lea.sflag (!%p177_p6), [#allocation3], %s182_s8  ;;  %s186_s17 = scalar_lea.vmem (!%p177_p6), [#allocation2], %s467_s9 }
  0x24   : > { %591 = dma.done.wait (%p678_p7), %s183_s15, 128  }
  0x25   : > { %593 = vsyncadd (%p678_p7), %s183_s15, 4294967168  ;;  %p221_p8 = scmp.lt.s32.totalorder %s608_s12, 1  ;;  %v296_v0 = vlaneseq  ;;  %vm242_vm0 = vcmask 19456   ;;  %vm250_vm1 = vcmask 1043456   ;;  %v619_v4 = vmov 0.0   ;;  %v244_v5 = vld [vmem:[%s186_s17] sm:$0xff] }
  0x26   : > { %v248_v8 = vcombine.high %v244_v5, %v244_v5  ;;  %v251_v9 = vsel %vm250_vm1, %v244_v5, -inf  ;;  %vm348_vm4 = vcmask 3072   ;;  %vm352_vm5 = vcmask 11272  }
  0x27   : > { %s771_s12 = smov (!%p221_p8, %s608_s12), 1  ;;  %v297_v1 = vshrl.u32 %v296_v0, 7  ;;  %v252_v10 = vrot.slane %v251_v9, 4  ;;  %vm356_vm6 = vcmask 19472  }
  0x28   : > { %s468_s18 = sshll.u32 %s771_s12, 1  ;;  %s469_s19 = sshll.u32 %s771_s12, 2  ;;  %v258_v11 = vsel %vm250_vm1, %v248_v8, -inf }
  0x29   : > { %s227_s24 = scalar_lea.vmem %s758_s1, %s468_s18  ;;  %s720_s27 = scalar_lea.vmem %s759_s2, %s469_s19  ;;  %v300_v2 = vsub.s32 0, %v297_v1  ;;  %v304_v3 = vsub.s32 4, %v297_v1  ;;  %v253_v14 = vmax.f32 %v251_v9, %v252_v10  ;;  %v259_v15 = vrot.slane %v258_v11, 4 }
  0x2a   : > { %243 = vst.msk [vmem:[%s720_s27] sm:$0xf] %vm242_vm0, %v619_v4  ;;  %v245_v6 = vld [vmem:[%s227_s24] sm:$0x3] }
  0x2b   : > { %v246_v7 = vunpack.c.0.s8 %v245_v6  ;;  %v254_v18 = vrot.slane %v253_v14, 2  ;;  %v260_v19 = vmax.f32 %v258_v11, %v259_v15 }
  0x2d   : > { %v301_v12 = vrot.slane %v246_v7, %v300_v2  ;;  %v305_v13 = vrot.slane %v246_v7, %v304_v3  ;;  %v255_v20 = vmax.f32 %v253_v14, %v254_v18  ;;  %v261_v21 = vrot.slane %v260_v19, 2 }
  0x2f   : > { %v309_v16 = vrot.slane %v301_v12, %v300_v2  ;;  %v313_v17 = vrot.slane %v305_v13, %v300_v2  ;;  %v256_v26 = vrot.slane %v255_v20, 1  ;;  %v262_v27 = vmax.f32 %v260_v19, %v261_v21 }
  0x31   : > { %vm314_vm2 = vcmp.eq.s32.totalorder %v309_v16, %v297_v1  ;;  %vm315_vm3 = vcmp.eq.s32.totalorder %v313_v17, %v297_v1  ;;  %v257_v29 = vmax.f32 %v255_v20, %v256_v26  ;;  %v263_v30 = vrot.slane %v262_v27, 1  ;;  %v346_v1 = vld [vmem:[%s720_s27] sm:$0xf] }
  0x32   : > { %v470_v22 = vsel %vm314_vm2, 1.0, %v619_v4  ;;  %v471_v23 = vsel %vm315_vm3, 1.0, %v619_v4 }
  0x33   : > { %v341_v24 = vsel %vm250_vm1, %v470_v22, 0.0  ;;  %v342_v25 = vsel %vm250_vm1, %v471_v23, 0.0  ;;  %v264_v31 = vmax.f32 %v262_v27, %v263_v30  ;;  %v322_v54 = vcombine.low %v470_v22, %v471_v23 }
  0x34   : > { %v343_v28 = vadd.f32 %v342_v25, %v341_v24 }
  0x35   : > { %v267_v32 = vcombine.low %v257_v29, %v264_v31 }
  0x36   : > { %344 = vadd.xlane.f32.xlu1 %v343_v28 }
  0x37   : > { %v269_v33 = vsub.f32 %v244_v5, %v267_v32 }
  0x39   : > { %v270_v34 = vmul.f32 1.442695, %v269_v33 }
  0x3b   : > { %532 = vpow2.f32 %v270_v34 }
  0x48   : > { %v533_v35 = vpop.eup %532 }
  0x49   : > { %v273_v36 = vcombine.high %v533_v35, %v533_v35  ;;  %v275_v37 = vsel %vm250_vm1, %v533_v35, 0.0 }
  0x4a   : > { %v276_v38 = vrot.slane %v275_v37, 4 }
  0x4b   : > { %v282_v39 = vsel %vm250_vm1, %v273_v36, 0.0 }
  0x4c   : > { %v277_v40 = vadd.f32 %v276_v38, %v275_v37  ;;  %v283_v41 = vrot.slane %v282_v39, 4 }
  0x4e   : > { %v278_v42 = vrot.slane %v277_v40, 2  ;;  %v284_v43 = vadd.f32 %v283_v41, %v282_v39 }
  0x50   : > { %v279_v44 = vadd.f32 %v278_v42, %v277_v40  ;;  %v285_v45 = vrot.slane %v284_v43, 2 }
  0x52   : > { %v280_v46 = vrot.slane %v279_v44, 1  ;;  %v286_v47 = vadd.f32 %v285_v45, %v284_v43 }
  0x54   : > { %v281_v48 = vadd.f32 %v280_v46, %v279_v44  ;;  %v287_v49 = vrot.slane %v286_v47, 1 }
  0x56   : > { %v288_v50 = vadd.f32 %v287_v49, %v286_v47  ;;  %534 = vrcp.f32 %v281_v48 }
  0x58   : > { %536 = vrcp.f32 %v288_v50 }
  0x63   : > { %v535_v51 = vpop.eup %534 }
  0x65   : > { %v537_v52 = vpop.eup %536 }
  0x66   : > { %v293_v53 = vcombine.low %v535_v51, %v537_v52 }
  0x68   : > { %v295_v55 = vmul.f32 %v533_v35, %v293_v53 }
  0x6a   : > { %v324_v56 = vmul.f32 %v322_v54, %v295_v55  ;;  %v334_v57 = vcombine.high %v295_v55, %v295_v55  ;;  %v336_v61 = vsel %vm250_vm1, %v295_v55, 0.0 }
  0x6c   : > { %v326_v58 = vcombine.high %v324_v56, %v324_v56  ;;  %v328_v59 = vsel %vm250_vm1, %v324_v56, 0.0  ;;  %v337_v62 = vsel %vm250_vm1, %v334_v57, 0.0 }
  0x6d   : > { %v338_v0 = vadd.f32 %v337_v62, %v336_v61 }
  0x6e   : > { %v329_v60 = vsel %vm250_vm1, %v326_v58, 0.0 }
  0x6f   : > { %v330_v63 = vadd.f32 %v329_v60, %v328_v59 }
  0x71   : > { %331 = vadd.xlane.f32.xlu0 %v330_v63 }
  0x75   : > { %339 = vadd.xlane.f32.xlu0 %v338_v0 }
  0xbf   : > { %v345_v7 = vpop.xlane.xlu1 %344 }
  0xfa   : > { %v332_v2 = vpop.xlane.xlu0 %331 }
  0xfb   : > { %v347_v3 = vadd.f32 %v346_v1, %v332_v2 }
  0xfd   : > { %349 = vst.msk [vmem:[%s720_s27] sm:$0xf] %vm348_vm4, %v347_v3 }
  0xfe   : > { %v340_v4 = vpop.xlane.xlu0 %339 }
 0x104   : > { %v350_v5 = vld [vmem:[%s720_s27] sm:$0xf] }
 0x105   : > { %v351_v6 = vadd.f32 %v350_v5, %v340_v4 }
 0x107   : > { %353 = vst.msk [vmem:[%s720_s27] sm:$0xf] %vm352_vm5, %v351_v6 }
 0x10e   : > { %v354_v8 = vld [vmem:[%s720_s27] sm:$0xf] }
 0x10f   : > { %v355_v9 = vadd.f32 %v354_v8, %v345_v7 }
 0x111   : > { %357 = vst.msk [vmem:[%s720_s27] sm:$0xf] %vm356_vm6, %v355_v9 }
 0x112 PF: > { %s15_s14 = sadd.s32 1, %s616_s14   ;;  %s763_s9 = smov %s600_s10 }
 0x113   : > { %p12_p7 = scmp.ge.s32.totalorder %s15_s14, 4   ;;  %s764_s10 = smov %s604_s11 }
 0x114   : > { %s765_s11 = smov %s684_s21  ;;  %s766_s12 = smov %s612_s13 }
 0x115   : > { %s767_s13 = smov %s769_s16  ;;  %14 = sbr.rel (!%p12_p7) target bundleno = 4 (0x4), region = 75 }
 0x11a   :  { %383 = vsyncpa [#allocation3], 1 }
 0x11b   :  { %385 = vsyncpa [#allocation3 + $0x1], 1 }

</bundles_post_ra>
